<compile_context>
chip_gen: v7x
topology: tpu7x:2x2x1
jax: 0.10.0
libtpu: 0.0.40
codegen_flags: <defaults>
</compile_context>

<pallas_src>
import functools

import jax
import jax.numpy as jnp
from jax import lax
from jax.experimental import pallas as pl
from jax.experimental.pallas import tpu as pltpu


def _round_up(x, m):
    return (x + m - 1) // m * m


def _cdiv(a, b):
    return (a + b - 1) // b


def _block_kernel(x_ref, w_ref, b_ref, o_ref, *, kernel_size, l_out, l_pad):
    # x_ref: (BT, l_pad + K - 1, E)  raw (time-padded) embeddings for BT batch elements
    # w_ref: (K*E, Hp)               im2col-packed conv weight (lane-padded Hp)
    # b_ref: (1, Hp)                 conv bias (f32, lane-padded)
    # o_ref: (BT, Hp)                pooled output tile (lane-dense store)
    bt, _, e = x_ref.shape
    hp = w_ref.shape[1]
    x = x_ref[...]

    # In-kernel im2col: K shifted time-slices concatenated along the feature (lane)
    # axis -> contraction dim K*E; batch*time folded into MXU rows (bt*l_pad).
    if kernel_size == 1:
        patches = x[:, :l_pad, :]
    else:
        patches = jnp.concatenate(
            [x[:, k:k + l_pad, :] for k in range(kernel_size)], axis=-1)
    patches = patches.reshape(bt * l_pad, kernel_size * e)

    # Single 2-D matmul; accumulation over the K*E contraction happens inside the MXU.
    y = jnp.dot(patches, w_ref[...], preferred_element_type=jnp.float32)
    y = y.reshape(bt, l_pad, hp)

    # Mask time-padding rows so they never win the max-pool.
    if l_pad != l_out:
        t_ids = lax.broadcasted_iota(jnp.int32, (bt, l_pad, hp), 1)
        y = jnp.where(t_ids < l_out, y, -jnp.inf)

    # MaxPool over time first; bias + ReLU hoisted past the pool:
    #   max_t(relu(c_t + b)) == relu(max_t(c_t) + b)
    pooled = jnp.max(y, axis=1)                                      # (BT, Hp)
    o_ref[...] = jnp.maximum(pooled + b_ref[...], 0.0).astype(o_ref.dtype)


def textcnn_block_forward(batch_emb, weight, bias, kernel_size, *,
                          block_batch=32, compute_dtype=jnp.float32):
    """batch_emb: (B, 1, max_len, emb_len)
       weight   : (hidden_num, 1, kernel_size, emb_len)  (nn.Conv2d layout)
       bias     : (hidden_num,)
       returns  : (B, hidden_num) float32"""
    B, _, max_len, emb_len = batch_emb.shape
    hidden_num = weight.shape[0]
    l_out = max_len - kernel_size + 1
    assert l_out >= 1

    # Pad the pooled-window length to a sublane multiple (8) so the in-kernel
    # reshape (bt, l_pad, K*E) -> (bt*l_pad, K*E) never crosses (8,128) tiles.
    l_pad = _round_up(l_out, 8)
    len_pad = l_pad + kernel_size - 1                      # >= max_len

    # Batch tile: bt*l_pad MXU rows per matmul (fills 256-row v6e/v7x, 128-row v5e).
    bt = min(block_batch, _round_up(B, 8))
    n_tiles = _cdiv(B, bt)
    bt = min(bt, _round_up(_cdiv(B, n_tiles), 8))          # avoid over-padding b_pad
    if _cdiv(B, bt) < 2 and B >= 16:                       # >=2 grid steps -> both v7x TCs
        bt = max(8, _round_up(_cdiv(B, 2), 8))
    b_pad = _round_up(B, bt)

    # Lane-pad output channels so the pooled store is an unmasked, lane-dense vst.
    hp = _round_up(hidden_num, 128)

    # Raw embeddings straight to the kernel — no wrapper im2col (no Kx HBM expansion).
    x = batch_emb[:, 0, :, :].astype(compute_dtype)                   # (B, max_len, E)
    x = jnp.pad(x, ((0, b_pad - B), (0, len_pad - max_len), (0, 0)))

    # (H, 1, K, E) -> (K*E, H) im2col weight (tap-major, matching patch layout),
    # zero-pad channels H -> Hp.
    w = weight.reshape(hidden_num, kernel_size * emb_len).T.astype(compute_dtype)
    w = jnp.pad(w, ((0, 0), (0, hp - hidden_num)))
    b = jnp.pad(bias.astype(jnp.float32), (0, hp - hidden_num)).reshape(1, hp)

    kernel = functools.partial(_block_kernel, kernel_size=kernel_size,
                               l_out=l_out, l_pad=l_pad)

    itemsize = jnp.dtype(compute_dtype).itemsize
    cost = pl.CostEstimate(
        flops=2 * b_pad * l_pad * kernel_size * emb_len * hp,
        transcendentals=0,
        bytes_accessed=(b_pad * len_pad * emb_len
                        + kernel_size * emb_len * hp) * itemsize
                       + (hp + b_pad * hp) * 4,
    )

    out = pl.pallas_call(
        kernel,
        out_shape=jax.ShapeDtypeStruct((b_pad, hp), jnp.float32),
        grid_spec=pltpu.PrefetchScalarGridSpec(
            num_scalar_prefetch=0,
            grid=(b_pad // bt,),
            in_specs=[
                pl.BlockSpec((bt, len_pad, emb_len), lambda i: (i, 0, 0)),
                pl.BlockSpec((kernel_size * emb_len, hp), lambda i: (0, 0)),
                pl.BlockSpec((1, hp), lambda i: (0, 0)),
            ],
            out_specs=pl.BlockSpec((bt, hp), lambda i: (i, 0)),
        ),
        compiler_params=pltpu.CompilerParams(
            dimension_semantics=("parallel",),   # batch axis: megacore / v7x 2-TC split
        ),
        cost_estimate=cost,
    )(x, w, b)

    # TODO(synk): fuse the K in {2,3,4} branches of the full TextCNN into one kernel so
    # the real output lane dim is n_branches*H (and 256 on v6e/v7x) instead of padding a
    # single H=8 up to 128.
    return out[:B, :hidden_num]


if __name__ == "__main__":
    # Small shapes consistent with the module's forward:
    #   batch=2, in_channels=1, max_len=16, emb_len=32, kernel_size=3, hidden_num=8
    B, max_len, emb_len = 2, 16, 32
    kernel_size, hidden_num = 3, 8

    key = jax.random.PRNGKey(0)
    k_x, k_w, k_b = jax.random.split(key, 3)

    batch_emb = jax.random.normal(k_x, (B, 1, max_len, emb_len), dtype=jnp.float32)
    # Deterministic synthetic Conv2d parameters (same shapes as nn.Conv2d init)
    fan_in = 1 * kernel_size * emb_len
    bound = 1.0 / (fan_in ** 0.5)
    weight = jax.random.uniform(k_w, (hidden_num, 1, kernel_size, emb_len),
                                minval=-bound, maxval=bound, dtype=jnp.float32)
    bias = jax.random.uniform(k_b, (hidden_num,),
                              minval=-bound, maxval=bound, dtype=jnp.float32)

    out = textcnn_block_forward(batch_emb, weight, bias, kernel_size)
    out = jax.block_until_ready(out)

    # Pure-JAX reference of the module's forward (conv -> relu -> maxpool over time).
    x = batch_emb[:, 0]                                               # (B, L, E)
    l_out = max_len - kernel_size + 1
    ref_patches = jnp.stack([x[:, k:k + l_out, :] for k in range(kernel_size)],
                            axis=2).reshape(B, l_out, kernel_size * emb_len)
    ref = jnp.einsum("blf,hf->blh", ref_patches,
                     weight.reshape(hidden_num, -1)) + bias
    ref = jnp.max(jnp.maximum(ref, 0.0), axis=1)                      # (B, H)

    assert out.shape == (B, hidden_num)
    assert jnp.allclose(out, ref, atol=1e-4, rtol=1e-4)

    print("KERNEL_OK")
</pallas_src>

<mosaic_0001>
module attributes {stable_mosaic.version = 11 : i64} {
  func.func @_block_kernel(%arg0: i32, %arg1: memref<8x18x32xf32, #tpu.memory_space<vmem>>, %arg2: memref<96x128xf32, #tpu.memory_space<vmem>>, %arg3: memref<1x128xf32, #tpu.memory_space<vmem>>, %arg4: memref<8x128xf32, #tpu.memory_space<vmem>>) attributes {dimension_semantics = [#tpu.dimension_semantics<parallel>], iteration_bounds = array<i64: 1>, scalar_prefetch = 0 : i64, scratch_operands = 0 : i64, tpu.core_type = #tpu.core_type<tc>, window_params = [{transform_indices = @transform_0, window_bounds = array<i64: 8, 18, 32>}, {pipeline_mode = #tpu.pipeline_mode<synchronous>, transform_indices = @transform_1, window_bounds = array<i64: 96, 128>}, {pipeline_mode = #tpu.pipeline_mode<synchronous>, transform_indices = @transform_2, window_bounds = array<i64: 1, 128>}, {transform_indices = @transform_3, window_bounds = array<i64: 8, 128>}]} {
    %c0 = arith.constant 0 : index
    %c0_0 = arith.constant 0 : index
    %c0_1 = arith.constant 0 : index
    %0 = vector.load %arg1[%c0, %c0_0, %c0_1] : memref<8x18x32xf32, #tpu.memory_space<vmem>>, vector<8x18x32xf32>
    %1 = vector.extract_strided_slice %0 {offsets = [0, 0, 0], sizes = [8, 16, 32], strides = [1, 1, 1]} : vector<8x18x32xf32> to vector<8x16x32xf32>
    %2 = vector.extract_strided_slice %0 {offsets = [0, 1, 0], sizes = [8, 16, 32], strides = [1, 1, 1]} : vector<8x18x32xf32> to vector<8x16x32xf32>
    %3 = vector.extract_strided_slice %0 {offsets = [0, 2, 0], sizes = [8, 16, 32], strides = [1, 1, 1]} : vector<8x18x32xf32> to vector<8x16x32xf32>
    %4 = tpu.concatenate %1, %2, %3 in 2 : vector<8x16x32xf32>, vector<8x16x32xf32>, vector<8x16x32xf32> -> vector<8x16x96xf32>
    %5 = vector.shape_cast %4 : vector<8x16x96xf32> to vector<128x96xf32>
    %c0_2 = arith.constant 0 : index
    %c0_3 = arith.constant 0 : index
    %6 = vector.load %arg2[%c0_2, %c0_3] : memref<96x128xf32, #tpu.memory_space<vmem>>, vector<96x128xf32>
    %cst = arith.constant dense<0.000000e+00> : vector<128x128xf32>
    %7 = tpu.matmul %5, %6, %cst {dimension_numbers = #tpu.dot_dimension_numbers<[1], [0], [0], [1], [0, 0, 1, 1], [], []>} : vector<128x96xf32>, vector<96x128xf32>, vector<128x128xf32> -> vector<128x128xf32>
    %8 = vector.shape_cast %7 : vector<128x128xf32> to vector<8x16x128xf32>
    %9 = tpu.iota {dimensions = array<i32: 1>} : vector<8x16x128xi32>
    %c14_i32 = arith.constant 14 : i32
    %10 = vector.broadcast %c14_i32 : i32 to vector<8x16x128xi32>
    %11 = arith.cmpi slt, %9, %10 : vector<8x16x128xi32>
    %cst_4 = arith.constant 0xFF800000 : f32
    %12 = vector.broadcast %cst_4 : f32 to vector<8x16x128xf32>
    %13 = arith.select %11, %8, %12 : vector<8x16x128xi1>, vector<8x16x128xf32>
    %cst_5 = arith.constant dense<0xFF800000> : vector<8x128xf32>
    %14 = vector.multi_reduction <maximumf>, %13, %cst_5 [1] : vector<8x16x128xf32> to vector<8x128xf32>
    %c0_6 = arith.constant 0 : index
    %c0_7 = arith.constant 0 : index
    %15 = vector.load %arg3[%c0_6, %c0_7] : memref<1x128xf32, #tpu.memory_space<vmem>>, vector<1x128xf32>
    %16 = vector.broadcast %15 : vector<1x128xf32> to vector<8x128xf32>
    %17 = arith.addf %14, %16 : vector<8x128xf32>
    %cst_8 = arith.constant 0.000000e+00 : f32
    %18 = vector.broadcast %cst_8 : f32 to vector<8x128xf32>
    %19 = arith.maximumf %17, %18 : vector<8x128xf32>
    %c0_9 = arith.constant 0 : index
    %c0_10 = arith.constant 0 : index
    %20 = vector.load %arg4[%c0_9, %c0_10] : memref<8x128xf32, #tpu.memory_space<vmem>>, vector<8x128xf32>
    tpu.vector_store %arg4[%c0_9, %c0_10], %19 {strides = array<i32>} : memref<8x128xf32, #tpu.memory_space<vmem>>, vector<8x128xf32>,
    return
  }
  func.func @transform_0(%arg0: i32) -> (i32, i32, i32) {
    %c0_i32 = arith.constant 0 : i32
    %c0_i32_0 = arith.constant 0 : i32
    %c0_i32_1 = arith.constant 0 : i32
    return %arg0, %c0_i32, %c0_i32_0 : i32, i32, i32
  }
  func.func @transform_1(%arg0: i32) -> (i32, i32) {
    %c0_i32 = arith.constant 0 : i32
    %c0_i32_0 = arith.constant 0 : i32
    %c0_i32_1 = arith.constant 0 : i32
    return %c0_i32, %c0_i32_0 : i32, i32
  }
  func.func @transform_2(%arg0: i32) -> (i32, i32) {
    %c0_i32 = arith.constant 0 : i32
    %c0_i32_0 = arith.constant 0 : i32
    %c0_i32_1 = arith.constant 0 : i32
    return %c0_i32, %c0_i32_0 : i32, i32
  }
  func.func @transform_3(%arg0: i32) -> (i32, i32) {
    %c0_i32 = arith.constant 0 : i32
    %c0_i32_0 = arith.constant 0 : i32
    return %arg0, %c0_i32 : i32, i32
  }
}

</mosaic_0001>

<bundles_post_ra>
// kernel: tpu_custom_call.1
= control target key start
LH: loop header
LB: loop body
LE: loop exit
PB: predicated region body
PF: predicated region fallthrough
CT: control target
= control target key end

     0   :  { %vm152_vm0 = vcmask 1045504   ;;  %vm63_vm1 = vcmask 1046528   ;;  %s782_s26 = smov 64   ;;  %s783_s27 = smov 32   ;;  %s1149_s0 = inlined_call_operand.vmem [shape: f32[8,18,32], index: 0, kind: input, shape index: {}]   ;;  %s1150_s1 = inlined_call_operand.vmem [shape: f32[96,128], index: 1, kind: input, shape index: {}]   ;;  %s1151_s2 = inlined_call_operand.vmem [shape: f32[1,128], index: 2, kind: input, shape index: {}]   ;;  %s1152_s3 = inlined_call_operand.hbm [shape: f32[8,128], index: 3, kind: output, shape index: {}]  }
   0x1   :  { %v808_v0 = vld [vmem:[%s1149_s0] sm:$0xff]  ;;  %v813_v1 = vld [vmem:[%s1149_s0 + $0x8] sm:$0xff]  ;;  %v17_v6 = vld [vmem:[%s1149_s0 + $0x10] sm:$0x3] }
   0x2   :  { %v153_v2 = vrot.slane %v808_v0, 2  ;;  %v154_v3 = vrot.slane %v813_v1, 2  ;;  %v64_v4 = vrot.slane %v808_v0, 1  ;;  %v65_v5 = vrot.slane %v813_v1, 1  ;;  %v825_v9 = vld [vmem:[%s1149_s0 + $0x60] sm:$0xff]  ;;  %v830_v10 = vld [vmem:[%s1149_s0 + $0x68] sm:$0xff] }
   0x3   :  { %v156_v7 = vrot.slane %v17_v6, 2  ;;  %v67_v8 = vrot.slane %v17_v6, 1  ;;  %v835_v11 = vld [vmem:[%s1149_s0 + $0x18] sm:$0xff]  ;;  %v842_v14 = vld [vmem:[%s1149_s0 + $0x20] sm:$0xff]  ;;  %v84_v15 = vrot.slane %v825_v9, 1  ;;  %v85_v16 = vrot.slane %v830_v10, 1 }
   0x4   :  { %v155_v12 = vsel %vm152_vm0, %v153_v2, %v154_v3  ;;  %v66_v13 = vsel %vm63_vm1, %v64_v4, %v65_v5  ;;  %v69_v19 = vrot.slane %v835_v11, 1  ;;  %v70_v20 = vrot.slane %v842_v14, 1  ;;  %v29_v21 = vld [vmem:[%s1149_s0 + $0x70] sm:$0x3]  ;;  %v20_v22 = vld [vmem:[%s1149_s0 + $0x28] sm:$0x3] }
   0x5   :  { %193 = vrot.lane.b32.xlu1 %v155_v12, %s782_s26  ;;  %104 = vrot.lane.b32.xlu0 %v66_v13, %s783_s27  ;;  %v157_v17 = vsel %vm152_vm0, %v154_v3, %v156_v7  ;;  %v68_v18 = vsel %vm63_vm1, %v65_v5, %v67_v8  ;;  %v86_v23 = vsel %vm63_vm1, %v84_v15, %v85_v16  ;;  %v87_v25 = vrot.slane %v29_v21, 1 }
   0x6   :  { %v71_v24 = vsel %vm63_vm1, %v69_v19, %v70_v20  ;;  %v72_v26 = vrot.slane %v20_v22, 1  ;;  %v173_v27 = vrot.slane %v825_v9, 2  ;;  %v174_v28 = vrot.slane %v830_v10, 2 }
   0x7   :  { %v88_v29 = vsel %vm63_vm1, %v85_v16, %v87_v25  ;;  %v158_v31 = vrot.slane %v835_v11, 2  ;;  %v159_v32 = vrot.slane %v842_v14, 2 }
   0x8   :  { %v73_v30 = vsel %vm63_vm1, %v70_v20, %v72_v26 }
   0x9   :  { %195 = vrot.lane.b32.xlu1 %v157_v17, %s782_s26  ;;  %106 = vrot.lane.b32.xlu0 %v68_v18, %s783_s27 }
   0xd   :  { %120 = vrot.lane.b32.xlu1 %v86_v23, %s783_s27  ;;  %108 = vrot.lane.b32.xlu0 %v71_v24, %s783_s27 }
   0xe   :  { %8 = vsyncpa [#allocation3], 0  ;;  %v176_v33 = vrot.slane %v29_v21, 2  ;;  %v875_v34 = vld [vmem:[%s1149_s0 + $0x78] sm:$0xff]  ;;  %v880_v35 = vld [vmem:[%s1149_s0 + $0x80] sm:$0xff]  ;;  %v175_v36 = vsel %vm152_vm0, %v173_v27, %v174_v28  ;;  %v160_v37 = vsel %vm152_vm0, %v158_v31, %v159_v32  ;;  %v161_v38 = vrot.slane %v20_v22, 2 }
   0xf   :  { %v887_v39 = vld [vmem:[%s1149_s0 + $0x30] sm:$0xff]  ;;  %v275_v40 = vld [vmem:[%s1150_s1] sm:$0xff]  ;;  %v276_v41 = vld [vmem:[%s1150_s1 + $0x8] sm:$0xff]  ;;  %v89_v46 = vrot.slane %v875_v34, 1  ;;  %v90_v47 = vrot.slane %v880_v35, 1  ;;  %v178_v2 = vrot.slane %v875_v34, 2 }
  0x10   :  { %v898_v42 = vld [vmem:[%s1149_s0 + $0x38] sm:$0xff]  ;;  %v277_v43 = vld [vmem:[%s1150_s1 + $0x10] sm:$0xff]  ;;  %v177_v45 = vsel %vm152_vm0, %v174_v28, %v176_v33  ;;  %v719_v48 = vpack.c.bf16 %v276_v41, %v275_v40  ;;  %v162_v49 = vsel %vm152_vm0, %v159_v32, %v161_v38  ;;  %v74_v50 = vrot.slane %v887_v39, 1  ;;  %v32_v52 = vld [vmem:[%s1149_s0 + $0x88] sm:$0x3] }
  0x11   :  { %122 = vrot.lane.b32.xlu1 %v88_v29, %s783_s27  ;;  %110 = vrot.lane.b32.xlu0 %v73_v30, %s783_s27  ;;  %v278_v44 = vld [vmem:[%s1150_s1 + $0x18] sm:$0xff]  ;;  %v75_v51 = vrot.slane %v898_v42, 1  ;;  %v23_v54 = vld [vmem:[%s1149_s0 + $0x40] sm:$0x3]  ;;  %v91_v57 = vsel %vm63_vm1, %v89_v46, %v90_v47  ;;  %v92_v59 = vrot.slane %v32_v52, 1  ;;  %v179_v3 = vrot.slane %v880_v35, 2 }
  0x12   :  { %v723_v53 = vpack.c.bf16 %v278_v44, %v277_v43  ;;  %720 = vmatprep.subr.bf16.mxu0 %v719_v48  ;;  %v279_v55 = vld [vmem:[%s1150_s1 + $0x20] sm:$0xff]  ;;  %v280_v56 = vld [vmem:[%s1150_s1 + $0x28] sm:$0xff]  ;;  %743 = vmatprep.subr.bf16.mxu1 %v719_v48  ;;  %v77_v60 = vrot.slane %v23_v54, 1  ;;  %v281_v62 = vld [vmem:[%s1150_s1 + $0x30] sm:$0xff]  ;;  %v163_v4 = vrot.slane %v887_v39, 2  ;;  %v164_v7 = vrot.slane %v898_v42, 2 }
  0x13   :  { %722 = vmatpush3.bf16.msra.mxu0 %v719_v48  ;;  %749 = vmatpush3.bf16.msra.mxu1 %v719_v48  ;;  %v76_v58 = vsel %vm63_vm1, %v74_v50, %v75_v51  ;;  %v727_v61 = vpack.c.bf16 %v280_v56, %v279_v55  ;;  %v282_v63 = vld [vmem:[%s1150_s1 + $0x38] sm:$0xff]  ;;  %v93_v5 = vsel %vm63_vm1, %v90_v47, %v92_v59  ;;  %v283_v12 = vld [vmem:[%s1150_s1 + $0x40] sm:$0xff]  ;;  %v284_v13 = vld [vmem:[%s1150_s1 + $0x48] sm:$0xff]  ;;  %v181_v15 = vrot.slane %v32_v52, 2 }
  0x14   :  { %724 = vmatprep.subr.bf16.mxu0 %v723_v53  ;;  %744 = vmatprep.subr.bf16.mxu1 %v723_v53  ;;  %v78_v6 = vsel %vm63_vm1, %v75_v51, %v77_v60  ;;  %v731_v8 = vpack.c.bf16 %v282_v63, %v281_v62  ;;  %v180_v16 = vsel %vm152_vm0, %v178_v2, %v179_v3  ;;  %v166_v18 = vrot.slane %v23_v54, 2  ;;  %v957_v19 = vld [vmem:[%s1149_s0 + $0x90] sm:$0xff]  ;;  %v962_v20 = vld [vmem:[%s1149_s0 + $0x98] sm:$0xff]  ;;  %v967_v21 = vld [vmem:[%s1149_s0 + $0x48] sm:$0xff] }
  0x15   :  { %209 = vrot.lane.b32.xlu1 %v175_v36, %s782_s26  ;;  %197 = vrot.lane.b32.xlu0 %v160_v37, %s782_s26  ;;  %v165_v17 = vsel %vm152_vm0, %v163_v4, %v164_v7  ;;  %v735_v22 = vpack.c.bf16 %v284_v13, %v283_v12  ;;  %v972_v23 = vld [vmem:[%s1149_s0 + $0x50] sm:$0xff]  ;;  %v286_v25 = vld [vmem:[%s1150_s1 + $0x58] sm:$0xff]  ;;  %v182_v26 = vsel %vm152_vm0, %v179_v3, %v181_v15  ;;  %v94_v27 = vrot.slane %v957_v19, 1 }
  0x16   :  { %v285_v24 = vld [vmem:[%s1150_s1 + $0x50] sm:$0xff]  ;;  %v95_v28 = vrot.slane %v962_v20, 1  ;;  %v167_v29 = vsel %vm152_vm0, %v164_v7, %v166_v18  ;;  %v79_v30 = vrot.slane %v967_v21, 1  ;;  %v80_v31 = vrot.slane %v972_v23, 1  ;;  %v35_v33 = vld [vmem:[%s1149_s0 + $0xa0] sm:$0x3] }
  0x17   :  { %726 = vmatpush3.bf16.msra.mxu0 %v723_v53  ;;  %750 = vmatpush3.bf16.msra.mxu1 %v723_v53  ;;  %v739_v32 = vpack.c.bf16 %v286_v25, %v285_v24  ;;  %v26_v36 = vld [vmem:[%s1149_s0 + $0x58] sm:$0x3]  ;;  %v97_v40 = vrot.slane %v35_v33, 1  ;;  %v183_v43 = vrot.slane %v957_v19, 2  ;;  %v184_v44 = vrot.slane %v962_v20, 2  ;;  %v1013_v53 = vld [vmem:[%s1149_s0 + $0xb0] sm:$0xff] }
  0x18   :  { %728 = vmatprep.subr.bf16.mxu0 %v727_v61  ;;  %745 = vmatprep.subr.bf16.mxu1 %v727_v61  ;;  %v96_v37 = vsel %vm63_vm1, %v94_v27, %v95_v28  ;;  %v81_v38 = vsel %vm63_vm1, %v79_v30, %v80_v31  ;;  %v82_v41 = vrot.slane %v26_v36, 1  ;;  %v168_v47 = vrot.slane %v967_v21, 2  ;;  %v38_v54 = vld [vmem:[%s1149_s0 + $0xb8] sm:$0x3]  ;;  %v1021_v55 = vld [vmem:[%s1149_s0 + $0xa8] sm:$0xff] }
  0x19   :  { %211 = vrot.lane.b32.xlu1 %v177_v45, %s782_s26  ;;  %199 = vrot.lane.b32.xlu0 %v162_v49, %s782_s26  ;;  %v98_v45 = vsel %vm63_vm1, %v95_v28, %v97_v40  ;;  %v169_v48 = vrot.slane %v972_v23, 2  ;;  %v185_v49 = vsel %vm152_vm0, %v183_v43, %v184_v44  ;;  %v186_v51 = vrot.slane %v35_v33, 2 }
  0x1a   :  { %v83_v46 = vsel %vm63_vm1, %v80_v31, %v82_v41  ;;  %v171_v52 = vrot.slane %v26_v36, 2  ;;  %v100_v56 = vrot.slane %v1013_v53, 1  ;;  %v102_v59 = vrot.slane %v38_v54, 1 }
  0x1b   :  { %730 = vmatpush3.bf16.msra.mxu0 %v727_v61  ;;  %751 = vmatpush3.bf16.msra.mxu1 %v727_v61  ;;  %v170_v50 = vsel %vm152_vm0, %v168_v47, %v169_v48  ;;  %v99_v60 = vrot.slane %v1021_v55, 1  ;;  %v189_v61 = vrot.slane %v1013_v53, 2  ;;  %v191_v2 = vrot.slane %v38_v54, 2 }
  0x1c   :  { %732 = vmatprep.subr.bf16.mxu0 %v731_v8  ;;  %746 = vmatprep.subr.bf16.mxu1 %v731_v8  ;;  %v103_v62 = vsel %vm63_vm1, %v100_v56, %v102_v59  ;;  %v188_v3 = vrot.slane %v1021_v55, 2  ;;  %vm241_vm2 = vcmask 261120   ;;  %vm258_vm3 = vcmask 523264  }
  0x1d   :  { %124 = vrot.lane.b32.xlu1 %v91_v57, %s783_s27  ;;  %112 = vrot.lane.b32.xlu0 %v76_v58, %s783_s27  ;;  %v187_v57 = vsel %vm152_vm0, %v184_v44, %v186_v51  ;;  %v172_v58 = vsel %vm152_vm0, %v169_v48, %v171_v52  ;;  %v101_v63 = vsel %vm63_vm1, %v99_v60, %v100_v56  ;;  %vm287_vm4 = vcmask 785408  }
  0x1e   :  { %v192_v4 = vsel %vm152_vm0, %v189_v61, %v191_v2  ;;  %vm590_vm6 = vcmask 1041409   ;;  %vm593_vm7 = vcmask 1042434   ;;  %vm596_vm8 = vcmask 1043459  }
  0x1f   :  { %734 = vmatpush3.bf16.msra.mxu0 %v731_v8  ;;  %752 = vmatpush3.bf16.msra.mxu1 %v731_v8  ;;  %vm599_vm9 = vcmask 1044484   ;;  %vm602_vm10 = vcmask 1045509   ;;  %vm605_vm11 = vcmask 1046534   ;;  %vm608_vm12 = vcmask 1047559  }
  0x20   :  { %736 = vmatprep.subr.bf16.mxu0 %v735_v22  ;;  %747 = vmatprep.subr.bf16.mxu1 %v735_v22 }
  0x21   :  { %126 = vrot.lane.b32.xlu1 %v93_v5, %s783_s27  ;;  %114 = vrot.lane.b32.xlu0 %v78_v6, %s783_s27  ;;  %v190_v5 = vsel %vm152_vm0, %v188_v3, %v189_v61 }
  0x23   :  { %738 = vmatpush3.bf16.msra.mxu0 %v735_v22  ;;  %753 = vmatpush3.bf16.msra.mxu1 %v735_v22 }
  0x24   :  { %740 = vmatprep.subr.bf16.mxu0 %v739_v32  ;;  %748 = vmatprep.subr.bf16.mxu1 %v739_v32 }
  0x25   :  { %213 = vrot.lane.b32.xlu1 %v180_v16, %s782_s26  ;;  %201 = vrot.lane.b32.xlu0 %v165_v17, %s782_s26 }
  0x27   :  { %742 = vmatpush3.bf16.msra.mxu0 %v739_v32  ;;  %754 = vmatpush3.bf16.msra.mxu1 %v739_v32 }
  0x29   :  { %215 = vrot.lane.b32.xlu1 %v182_v26, %s782_s26  ;;  %203 = vrot.lane.b32.xlu0 %v167_v29, %s782_s26 }
  0x2d   :  { %128 = vrot.lane.b32.xlu1 %v96_v37, %s783_s27  ;;  %116 = vrot.lane.b32.xlu0 %v81_v38, %s783_s27 }
  0x31   :  { %130 = vrot.lane.b32.xlu1 %v98_v45, %s783_s27  ;;  %118 = vrot.lane.b32.xlu0 %v83_v46, %s783_s27 }
  0x35   :  { %217 = vrot.lane.b32.xlu1 %v185_v49, %s782_s26  ;;  %205 = vrot.lane.b32.xlu0 %v170_v50, %s782_s26 }
  0x39   :  { %219 = vrot.lane.b32.xlu1 %v187_v57, %s782_s26  ;;  %207 = vrot.lane.b32.xlu0 %v172_v58, %s782_s26 }
  0x3d   :  { %134 = vrot.lane.b32.xlu1 %v103_v62, %s783_s27  ;;  %132 = vrot.lane.b32.xlu0 %v101_v63, %s783_s27 }
  0x41   :  { %223 = vrot.lane.b32.xlu1 %v192_v4, %s782_s26  ;;  %221 = vrot.lane.b32.xlu0 %v190_v5, %s782_s26 }
  0x77   :  { %v194_v6 = vpop.permute.xlu1 %193  ;;  %v105_v7 = vpop.permute.xlu0 %104 }
  0x78   :  { %v242_v8 = vsel %vm241_vm2, %v808_v0, %v105_v7 }
  0x79   :  { %v259_v12 = vsel %vm258_vm3, %v242_v8, %v194_v6  ;;  %v481_v8 = vlaneseq }
  0x7a   :  { %695 = vmatprep.mubr.msk.f32.mxu0 %vm287_vm4, %v259_v12 }
  0x7b   :  { %v196_v13 = vpop.permute.xlu1 %195  ;;  %v107_v15 = vpop.permute.xlu0 %106  ;;  %v482_v12 = vshrl.u32 %v481_v8, 7 }
  0x7c   :  { %v243_v16 = vsel %vm241_vm2, %v813_v1, %v107_v15 }
  0x7d   :  { %v260_v17 = vsel %vm258_vm3, %v243_v16, %v196_v13  ;;  %v1105_v13 = vadd.s32 8, %v482_v12 }
  0x7e   :  { %696 = vmatmul.mubr.msk.f32.vlgmr.msra.gmra.mrb[0].mxu0 %vm287_vm4, %v260_v17 }
  0x7f   :  { %v121_v18 = vpop.permute.xlu1 %120  ;;  %v109_v22 = vpop.permute.xlu0 %108  ;;  %vm485_vm5 = vcmp.lt.s32.totalorder %v1105_v13, 14 }
  0x80   :  { %v250_v0 = vsel %vm241_vm2, %v825_v9, %v121_v18  ;;  %v244_v26 = vsel %vm241_vm2, %v835_v11, %v109_v22 }
  0x83   :  { %v123_v24 = vpop.permute.xlu1 %122  ;;  %v111_v25 = vpop.permute.xlu0 %110 }
  0x84   :  { %v251_v30 = vsel %vm241_vm2, %v830_v10, %v123_v24  ;;  %v245_v31 = vsel %vm241_vm2, %v842_v14, %v111_v25 }
  0x87   :  { %v210_v27 = vpop.permute.xlu1 %209  ;;  %v198_v28 = vpop.permute.xlu0 %197 }
  0x88   :  { %v261_v29 = vsel %vm258_vm3, %v244_v26, %v198_v28  ;;  %v267_v1 = vsel %vm258_vm3, %v250_v0, %v210_v27 }
  0x89   :  { %698 = vmatprep.mubr.msk.f32.mxu0 %vm287_vm4, %v261_v29  ;;  %707 = vmatprep.mubr.msk.f32.mxu1 %vm287_vm4, %v267_v1 }
  0x8b   :  { %v212_v9 = vpop.permute.xlu1 %211  ;;  %v200_v32 = vpop.permute.xlu0 %199 }
  0x8c   :  { %v268_v11 = vsel %vm258_vm3, %v251_v30, %v212_v9  ;;  %v262_v33 = vsel %vm258_vm3, %v245_v31, %v200_v32 }
  0x8d   :  { %699 = vmatmul.mubr.msk.f32.gmra.mrb[2].mxu0 %vm287_vm4, %v262_v33  ;;  %708 = vmatmul.mubr.msk.f32.vlgmr.msra.gmra.mrb[0].mxu1 %vm287_vm4, %v268_v11 }
  0x8f   :  { %v125_v36 = vpop.permute.xlu1 %124  ;;  %v113_v37 = vpop.permute.xlu0 %112 }
  0x90   :  { %v252_v10 = vsel %vm241_vm2, %v875_v34, %v125_v36  ;;  %v246_v14 = vsel %vm241_vm2, %v887_v39, %v113_v37 }
  0x93   :  { %v127_v38 = vpop.permute.xlu1 %126  ;;  %v115_v40 = vpop.permute.xlu0 %114 }
  0x94   :  { %v253_v46 = vsel %vm241_vm2, %v880_v35, %v127_v38  ;;  %v247_v47 = vsel %vm241_vm2, %v898_v42, %v115_v40  ;;  %v1117_v38 = vld [vmem:[%s1151_s2] ss:$0 sm:$0xff]  ;;  %s784_s2 = smov [#allocation2]  }
  0x95   :  { %s618_s27 = sshll.u32 %s784_s2, 4  ;;  %s619_s27 = int_to_ptr.vmem [resolvable:$true] %s618_s27 }
  0x96   :  { %s758_s8 = scalar_lea.vmem %s619_s27, 128  ;;  %p763_p1 = scmp.lt.s32.totalorder %s619_s27, %s619_s27 }
  0x97   :  { %v214_v41 = vpop.permute.xlu1 %213  ;;  %v202_v43 = vpop.permute.xlu0 %201  ;;  %p759_p0 = scmp.ne.s32.totalorder %s619_s27, %s758_s8  ;;  %p764_p2 = scmp.lt.s32.totalorder %s758_s8, %s758_s8 }
  0x98   :  { %v269_v44 = vsel %vm258_vm3, %v252_v10, %v214_v41  ;;  %v263_v45 = vsel %vm258_vm3, %v246_v14, %v202_v43 }
  0x99   :  { %701 = vmatprep.mubr.msk.f32.mxu0 %vm287_vm4, %v263_v45  ;;  %710 = vmatprep.mubr.msk.f32.mxu1 %vm287_vm4, %v269_v44  ;;  %p765_p3 = por %p764_p2, %p763_p1 }
  0x9b   :  { %v216_v34 = vpop.permute.xlu1 %215  ;;  %v204_v48 = vpop.permute.xlu0 %203  ;;  %p766_p4 = pnand %p765_p3, %p759_p0 }
  0x9c   :  { %v270_v39 = vsel %vm258_vm3, %v253_v46, %v216_v34  ;;  %v264_v49 = vsel %vm258_vm3, %v247_v47, %v204_v48 }
  0x9d   :  { %702 = vmatmul.mubr.msk.f32.gmra.mrb[4].mxu0 %vm287_vm4, %v264_v49  ;;  %711 = vmatmul.mubr.msk.f32.gmra.mrb[2].mxu1 %vm287_vm4, %v270_v39 }
  0x9f   :  { %v129_v50 = vpop.permute.xlu1 %128  ;;  %v117_v51 = vpop.permute.xlu0 %116 }
  0xa0   :  { %v254_v35 = vsel %vm241_vm2, %v957_v19, %v129_v50  ;;  %v248_v42 = vsel %vm241_vm2, %v967_v21, %v117_v51 }
  0xa3   :  { %v131_v52 = vpop.permute.xlu1 %130  ;;  %v119_v54 = vpop.permute.xlu0 %118 }
  0xa4   :  { %v255_v60 = vsel %vm241_vm2, %v962_v20, %v131_v52  ;;  %v249_v61 = vsel %vm241_vm2, %v972_v23, %v119_v54 }
  0xa7   :  { %v218_v56 = vpop.permute.xlu1 %217  ;;  %v206_v57 = vpop.permute.xlu0 %205 }
  0xa8   :  { %v271_v58 = vsel %vm258_vm3, %v254_v35, %v218_v56  ;;  %v265_v59 = vsel %vm258_vm3, %v248_v42, %v206_v57 }
  0xa9   :  { %704 = vmatprep.mubr.msk.f32.mxu0 %vm287_vm4, %v265_v59  ;;  %713 = vmatprep.mubr.msk.f32.mxu1 %vm287_vm4, %v271_v58 }
  0xab   :  { %v220_v19 = vpop.permute.xlu1 %219  ;;  %v208_v62 = vpop.permute.xlu0 %207 }
  0xac   :  { %v272_v21 = vsel %vm258_vm3, %v255_v60, %v220_v19  ;;  %v266_v63 = vsel %vm258_vm3, %v249_v61, %v208_v62 }
  0xad   :  { %705 = vmatmul.mubr.msk.f32.gmra.mrb[6].mxu0 %vm287_vm4, %v266_v63  ;;  %714 = vmatmul.mubr.msk.f32.gmra.mrb[4].mxu1 %vm287_vm4, %v272_v21 }
  0xaf   :  { %v135_v2 = vpop.permute.xlu1 %134  ;;  %v133_v3 = vpop.permute.xlu0 %132 }
  0xb0   :  { %v257_v4 = vsel %vm241_vm2, %v1013_v53, %v135_v2  ;;  %v256_v20 = vsel %vm241_vm2, %v1021_v55, %v133_v3 }
  0xb3   :  { %v224_v5 = vpop.permute.xlu1 %223  ;;  %v222_v23 = vpop.permute.xlu0 %221 }
  0xb4   :  { %v274_v6 = vsel %vm258_vm3, %v257_v4, %v224_v5  ;;  %v273_v7 = vsel %vm258_vm3, %v256_v20, %v222_v23 }
  0xb5   :  { %716 = vmatprep.mubr.msk.f32.mxu1 %vm287_vm4, %v273_v7 }
  0xb6   :  { %717 = vmatmul.mubr.msk.f32.gmra.mrb[6].mxu1 %vm287_vm4, %v274_v6 }
 0x151   :  { %v697_v53 = vpop.f32.mrb[0].mxu0 }
 0x152   :  { %v487_v55 = vsel %vm485_vm5, %v697_v53, -inf  ;;  %v402_v15 = vpop.f32.mrb[1].mxu0 }
 0x153   :  { %v502_v16 = vmax.f32 %v402_v15, %v487_v55 }
 0x155   :  { %v503_v17 = vrot.slane %v502_v16, 4 }
 0x157   :  { %v504_v18 = vmax.f32 %v502_v16, %v503_v17 }
 0x159   :  { %v505_v22 = vrot.slane %v504_v18, 2 }
 0x15b   :  { %v506_v30 = vmax.f32 %v504_v18, %v505_v22 }
 0x15d   :  { %v507_v32 = vrot.slane %v506_v30, 1 }
 0x15f   :  { %v508_v36 = vmax.f32 %v506_v30, %v507_v32 }
 0x160   :  { %v700_v24 = vpop.f32.mrb[2].mxu0  ;;  %v709_v25 = vpop.f32.mrb[0].mxu1 }
 0x161   :  { %v489_v0 = vsel %vm485_vm5, %v700_v24, -inf  ;;  %v495_v26 = vsel %vm485_vm5, %v709_v25, -inf  ;;  %v412_v27 = vpop.f32.mrb[3].mxu0  ;;  %v442_v28 = vpop.f32.mrb[1].mxu1  ;;  %v565_v10 = vadd.f32 %v1117_v38, %v508_v36 }
 0x162   :  { %v509_v29 = vmax.f32 %v412_v27, %v489_v0  ;;  %v530_v1 = vmax.f32 %v442_v28, %v495_v26 }
 0x163   :  { %v573_v49 = vmax.f32 %v565_v10, 0.0 }
 0x164   :  { %v510_v31 = vrot.slane %v509_v29, 4  ;;  %v531_v52 = vrot.slane %v530_v1, 4 }
 0x166   :  { %v511_v9 = vmax.f32 %v509_v29, %v510_v31  ;;  %v532_v57 = vmax.f32 %v530_v1, %v531_v52 }
 0x168   :  { %v512_v11 = vrot.slane %v511_v9, 2  ;;  %v533_v61 = vrot.slane %v532_v57, 2 }
 0x16a   :  { %v513_v33 = vmax.f32 %v511_v9, %v512_v11  ;;  %v534_v3 = vmax.f32 %v532_v57, %v533_v61 }
 0x16c   :  { %v514_v37 = vrot.slane %v513_v33, 1  ;;  %v535_v16 = vrot.slane %v534_v3, 1 }
 0x16e   :  { %v515_v40 = vmax.f32 %v513_v33, %v514_v37  ;;  %v536_v26 = vmax.f32 %v534_v3, %v535_v16 }
 0x170   :  { %v566_v14 = vadd.f32 %v1117_v38, %v515_v40  ;;  %v703_v41 = vpop.f32.mrb[4].mxu0  ;;  %v712_v43 = vpop.f32.mrb[2].mxu1  ;;  %v569_v33 = vadd.f32 %v1117_v38, %v536_v26 }
 0x171   :  { %v491_v44 = vsel %vm485_vm5, %v703_v41, -inf  ;;  %v497_v45 = vsel %vm485_vm5, %v712_v43, -inf  ;;  %v422_v46 = vpop.f32.mrb[5].mxu0  ;;  %v452_v47 = vpop.f32.mrb[3].mxu1 }
 0x172   :  { %v574_v34 = vmax.f32 %v566_v14, 0.0  ;;  %v516_v48 = vmax.f32 %v422_v46, %v491_v44  ;;  %v537_v39 = vmax.f32 %v452_v47, %v497_v45  ;;  %v577_v44 = vmax.f32 %v569_v33, 0.0 }
 0x174   :  { %v589_v50 = vrot.slane %v574_v34, 7  ;;  %v517_v51 = vrot.slane %v516_v48, 4  ;;  %v538_v42 = vrot.slane %v537_v39, 4 }
 0x176   :  { %v591_v54 = vsel %vm590_vm6, %v589_v50, %v573_v49  ;;  %v518_v35 = vmax.f32 %v516_v48, %v517_v51  ;;  %v539_v59 = vmax.f32 %v537_v39, %v538_v42  ;;  %v598_v39 = vrot.slane %v577_v44, 4 }
 0x178   :  { %v519_v56 = vrot.slane %v518_v35, 2  ;;  %v540_v62 = vrot.slane %v539_v59, 2 }
 0x17a   :  { %v520_v58 = vmax.f32 %v518_v35, %v519_v56  ;;  %v541_v7 = vmax.f32 %v539_v59, %v540_v62 }
 0x17c   :  { %v521_v60 = vrot.slane %v520_v58, 1  ;;  %v542_v17 = vrot.slane %v541_v7, 1 }
 0x17e   :  { %v522_v19 = vmax.f32 %v520_v58, %v521_v60  ;;  %v543_v28 = vmax.f32 %v541_v7, %v542_v17 }
 0x180   :  { %v567_v21 = vadd.f32 %v1117_v38, %v522_v19  ;;  %v706_v63 = vpop.f32.mrb[6].mxu0  ;;  %v715_v2 = vpop.f32.mrb[4].mxu1  ;;  %v570_v37 = vadd.f32 %v1117_v38, %v543_v28 }
 0x181   :  { %v493_v4 = vsel %vm485_vm5, %v706_v63, -inf  ;;  %v499_v20 = vsel %vm485_vm5, %v715_v2, -inf  ;;  %v432_v5 = vpop.f32.mrb[7].mxu0  ;;  %v462_v23 = vpop.f32.mrb[5].mxu1 }
 0x182   :  { %v575_v6 = vmax.f32 %v567_v21, 0.0  ;;  %v523_v8 = vmax.f32 %v432_v5, %v493_v4  ;;  %v544_v12 = vmax.f32 %v462_v23, %v499_v20  ;;  %v578_v13 = vmax.f32 %v570_v37, 0.0 }
 0x184   :  { %v592_v53 = vrot.slane %v575_v6, 6  ;;  %v524_v55 = vrot.slane %v523_v8, 4  ;;  %v545_v15 = vrot.slane %v544_v12, 4  ;;  %v601_v50 = vrot.slane %v578_v13, 3 }
 0x186   :  { %v525_v18 = vmax.f32 %v523_v8, %v524_v55  ;;  %v546_v22 = vmax.f32 %v544_v12, %v545_v15  ;;  %v594_v24 = vsel %vm593_vm7, %v592_v53, %v591_v54 }
 0x188   :  { %v526_v25 = vrot.slane %v525_v18, 2  ;;  %v547_v0 = vrot.slane %v546_v22, 2 }
 0x189   :  { %v718_v27 = vpop.f32.mrb[6].mxu1 }
 0x18a   :  { %v527_v29 = vmax.f32 %v525_v18, %v526_v25  ;;  %v548_v1 = vmax.f32 %v546_v22, %v547_v0  ;;  %v501_v30 = vsel %vm485_vm5, %v718_v27, -inf  ;;  %v472_v31 = vpop.f32.mrb[7].mxu1 }
 0x18b   :  { %v551_v9 = vmax.f32 %v472_v31, %v501_v30 }
 0x18c   :  { %v528_v32 = vrot.slane %v527_v29, 1  ;;  %v549_v11 = vrot.slane %v548_v1, 1 }
 0x18d   :  { %v552_v36 = vrot.slane %v551_v9, 4 }
 0x18e   :  { %v529_v40 = vmax.f32 %v527_v29, %v528_v32  ;;  %v550_v10 = vmax.f32 %v548_v1, %v549_v11 }
 0x18f   :  { %v553_v14 = vmax.f32 %v551_v9, %v552_v36 }
 0x190   :  { %v568_v41 = vadd.f32 %v1117_v38, %v529_v40  ;;  %v571_v43 = vadd.f32 %v1117_v38, %v550_v10 }
 0x191   :  { %v554_v45 = vrot.slane %v553_v14, 2 }
 0x192   :  { %v576_v46 = vmax.f32 %v568_v41, 0.0  ;;  %v579_v47 = vmax.f32 %v571_v43, 0.0 }
 0x193   :  { %v555_v34 = vmax.f32 %v553_v14, %v554_v45 }
 0x194   :  { %v595_v48 = vrot.slane %v576_v46, 5  ;;  %v604_v35 = vrot.slane %v579_v47, 2 }
 0x195   :  { %v556_v49 = vrot.slane %v555_v34, 1 }
 0x196   :  { %v597_v51 = vsel %vm596_vm8, %v595_v48, %v594_v24 }
 0x197   :  { %v557_v52 = vmax.f32 %v555_v34, %v556_v49  ;;  %v600_v54 = vsel %vm599_vm9, %v598_v39, %v597_v51 }
 0x198   :  { %v603_v42 = vsel %vm602_vm10, %v601_v50, %v600_v54 }
 0x199   :  { %v572_v56 = vadd.f32 %v1117_v38, %v557_v52  ;;  %v606_v57 = vsel %vm605_vm11, %v604_v35, %v603_v42 }
 0x19b   :  { %v580_v58 = vmax.f32 %v572_v56, 0.0 }
 0x19d   :  { %v607_v59 = vrot.slane %v580_v58, 1 }
 0x19f   :  { %v609_v60 = vsel %vm608_vm12, %v607_v59, %v606_v57 }
 0x1a0   :  { %611 = vst [vmem:[#allocation2] sm:$0xff] %v609_v60 }
 0x1a1   :  { %769 = shalt.err (!%p766_p4)
}
 0x1a2   :  { %s770_s11 = scalar_lea.hbm %s1152_s3, 128 }
 0x1a3   :  { %p771_p5 = scmp.ne.s32.totalorder %s1152_s3, %s770_s11  ;;  %p774_p6 = scmp.lt.u32.totalorder %s770_s11, %s1152_s3 }
 0x1a5   :  { %p776_p7 = pnand %p774_p6, %p771_p5 }
 0x1a7   :  { %779 = shalt.err (!%p776_p7)
}
 0x1a8   :  { %621 = dma.vmem_to_hbm [thread:$0]  %s619_s27, 128, %s1152_s3, [#allocation3]  }
 0x1a9   :  { %780 = dma.done.wait [#allocation3], 128  }
 0x1aa   :  { %781 = vsyncadd [#allocation3], 4294967168 }
 0x1ab   :  { %625 = vsyncpa [#allocation3], 1 }

</bundles_post_ra>
